<compile_context>
chip_gen: v6e
topology: v6e:2x2x1
jax: 0.10.0
libtpu: 0.0.40
codegen_flags: <defaults>
</compile_context>

<pallas_src>
import math

import jax
import jax.numpy as jnp
from jax.experimental import pallas as pl
from jax.experimental.pallas import tpu as pltpu


# ----------------------------------------------------------------------------
# Pallas kernel: fused 3-layer MLP
#   h1 = relu(xa@W1 + b1) ; h2 = relu(h1@W2 + b2) ; q = W3 @ h2^T + b3
# ----------------------------------------------------------------------------
def _mlp_kernel(xa_ref, w1_ref, b1_ref, w2_ref, b2_ref, w3_ref, b3_ref, out_ref):
    # fc1: [bm, d_in] bf16 @ [d_in, 256] bf16 -> f32
    h1 = jnp.dot(xa_ref[...], w1_ref[...], preferred_element_type=jnp.float32)
    h1 = jnp.maximum(h1 + b1_ref[...], 0.0)                       # [bm, 256] f32

    # fc2 (NoisyLinear 256->256): bf16 MXU operands, f32 bias/ReLU
    h2 = jnp.dot(h1.astype(jnp.bfloat16), w2_ref[...],
                 preferred_element_type=jnp.float32)
    h2 = jnp.maximum(h2 + b2_ref[...], 0.0)                       # [bm, 256] f32

    # fc3 (NoisyLinear 256->1): rhs-transposed matmul so the result is a
    # lane-dense [1, bm] row (no 128x padded output, no relayout needed).
    q = jax.lax.dot_general(w3_ref[...], h2,
                            dimension_numbers=(((1,), (1,)), ((), ())),
                            preferred_element_type=jnp.float32)   # [1, bm]
    out_ref[...] = (q + b3_ref[...]).astype(out_ref.dtype)


def _cdiv(a, b):
    return -(-a // b)


def _round_up(n, m):
    return _cdiv(n, m) * m


def _choose_tiling(B, block_m):
    """Pick (B_pad, bm): pad B to 128, tiles <= block_m rows, >=2 tiles when
    B spans more than one 128-row group (so v7x can use both TensorCores)."""
    B_pad = _round_up(max(B, 1), 128)
    groups = B_pad // 128
    max_groups_per_tile = max(block_m // 128, 1)
    n_tiles = _cdiv(groups, max_groups_per_tile)
    if groups >= 2:
        n_tiles = max(n_tiles, 2)
    groups_per_tile = _cdiv(groups, n_tiles)
    bm = groups_per_tile * 128
    B_pad = _round_up(B_pad, bm)
    return B_pad, bm


def noisy_q_forward(x, a, params, *, block_m=1024):
    """x: [B, obs_dim], a: [B, act_dim] -> q: [B, 1] f32."""
    w1, b1, w2, b2, w3, b3 = params
    B = x.shape[0]
    d_in = x.shape[1] + a.shape[1]
    hidden = w1.shape[1]

    B_pad, bm = _choose_tiling(B, block_m)
    n_tiles = B_pad // bm

    # Concatenate + pre-cast to bf16 in the wrapper (trivial [B, d_in] copy);
    # pad the batch to B_pad with zero rows.
    xa = jnp.concatenate([x.astype(jnp.float32), a.astype(jnp.float32)], axis=1)
    xa = xa.astype(jnp.bfloat16)
    if B_pad != B:
        xa = jnp.pad(xa, ((0, B_pad - B), (0, 0)))

    out = pl.pallas_call(
        _mlp_kernel,
        out_shape=jax.ShapeDtypeStruct((1, B_pad), jnp.float32),
        grid_spec=pltpu.PrefetchScalarGridSpec(
            num_scalar_prefetch=0,
            grid=(n_tiles,),
            in_specs=[
                pl.BlockSpec((bm, d_in), lambda i: (i, 0)),        # xa tile (bf16)
                pl.BlockSpec((d_in, hidden), lambda i: (0, 0)),    # W1 (bf16)
                pl.BlockSpec((1, hidden), lambda i: (0, 0)),       # b1 (f32)
                pl.BlockSpec((hidden, hidden), lambda i: (0, 0)),  # W2 (bf16)
                pl.BlockSpec((1, hidden), lambda i: (0, 0)),       # b2 (f32)
                pl.BlockSpec((1, hidden), lambda i: (0, 0)),       # W3 row (f32)
                pl.BlockSpec((1, 1), lambda i: (0, 0)),            # b3 (f32)
            ],
            out_specs=pl.BlockSpec((1, bm), lambda i: (0, i)),     # lane-dense row
        ),
        compiler_params=pltpu.CompilerParams(
            dimension_semantics=("parallel",),
            vmem_limit_bytes=32 * 1024 * 1024),
    )(xa, w1, b1, w2, b2, w3, b3)

    # [1, B_pad] -> [B, 1]; contiguous read of the first B lanes.
    return out[0, :B][:, None]


# ----------------------------------------------------------------------------
# Deterministic parameter construction (mirrors PyTorch __init__ + reset_noise)
# ----------------------------------------------------------------------------
def _scale_noise(key, size):
    z = jax.random.normal(key, (size,), dtype=jnp.float32)
    return jnp.sign(z) * jnp.sqrt(jnp.abs(z))


def _noisy_linear(param_key, noise_key, n_in, n_out, std_init):
    """Effective (weight [n_in, n_out], bias [1, n_out]) of a NoisyLinear in
    training mode, in x@W layout."""
    k_wmu, k_bmu = jax.random.split(param_key)
    k_in, k_out = jax.random.split(noise_key)
    mu_range = 1.0 / math.sqrt(n_in)
    w_mu = jax.random.uniform(k_wmu, (n_in, n_out), jnp.float32, -mu_range, mu_range)
    b_mu = jax.random.uniform(k_bmu, (1, n_out), jnp.float32, -mu_range, mu_range)
    w_sigma = std_init / math.sqrt(n_in)    # weight_sigma fill: std / sqrt(in_features)
    b_sigma = std_init / math.sqrt(n_out)   # bias_sigma fill:   std / sqrt(out_features)
    eps_in = _scale_noise(k_in, n_in)
    eps_out = _scale_noise(k_out, n_out)
    w = w_mu + w_sigma * jnp.outer(eps_in, eps_out)   # [in, out]
    b = b_mu + b_sigma * eps_out[None, :]             # [1, out]
    return w, b


def make_params(key, obs_dim, act_dim, hidden=256, std_init=10.0):
    d_in = obs_dim + act_dim
    k1w, k1b, k2p, k2n, k3p, k3n = jax.random.split(key, 6)

    # fc1: plain nn.Linear default init U(-1/sqrt(in), 1/sqrt(in))
    r1 = 1.0 / math.sqrt(d_in)
    w1 = jax.random.uniform(k1w, (d_in, hidden), jnp.float32, -r1, r1)
    b1 = jax.random.uniform(k1b, (1, hidden), jnp.float32, -r1, r1)

    # fc2: NoisyLinear(hidden, hidden)
    w2, b2 = _noisy_linear(k2p, k2n, hidden, hidden, std_init)

    # fc3: NoisyLinear(hidden, 1); keep as a [1, hidden] row (PyTorch layout)
    # for the in-kernel rhs-transposed matmul.
    w3_io, b3 = _noisy_linear(k3p, k3n, hidden, 1, std_init)
    w3 = w3_io.T                      # [1, hidden]

    return (w1.astype(jnp.bfloat16), b1,
            w2.astype(jnp.bfloat16), b2,
            w3, b3)                   # w3/b3 stay f32 (fc3 runs in f32)


def reference_forward(x, a, params):
    """Pure-JAX reference with the same bf16-operand / f32-accum scheme."""
    w1, b1, w2, b2, w3, b3 = params
    xa = jnp.concatenate([x.astype(jnp.float32), a.astype(jnp.float32)],
                         axis=1).astype(jnp.bfloat16)
    h1 = jnp.maximum(jnp.dot(xa, w1, preferred_element_type=jnp.float32) + b1, 0.0)
    h2 = jnp.maximum(jnp.dot(h1.astype(jnp.bfloat16), w2,
                             preferred_element_type=jnp.float32) + b2, 0.0)
    q = jnp.dot(h2, w3.T, preferred_element_type=jnp.float32) + b3
    return q                          # [B, 1]


if __name__ == "__main__":
    key = jax.random.PRNGKey(0)
    k_p, k_x, k_a, k_x2, k_a2 = jax.random.split(key, 5)

    obs_dim, act_dim, hidden = 8, 4, 256
    params = make_params(k_p, obs_dim, act_dim, hidden=hidden, std_init=10.0)

    # Small batch (B=2): padded to one 128-row tile, single grid step.
    B = 2
    x = jax.random.normal(k_x, (B, obs_dim), jnp.float32)
    a = jax.random.normal(k_a, (B, act_dim), jnp.float32)
    q = jax.block_until_ready(noisy_q_forward(x, a, params))
    q_ref = reference_forward(x, a, params)
    assert q.shape == (B, 1), q.shape
    assert jnp.allclose(q, q_ref, rtol=1e-2, atol=1e-2), (q, q_ref)

    # Larger batch: exercises 128-granular padding + a 2-tile "parallel" grid
    # (both v7x TensorCores usable).
    B2 = 300
    x2 = jax.random.normal(k_x2, (B2, obs_dim), jnp.float32)
    a2 = jax.random.normal(k_a2, (B2, act_dim), jnp.float32)
    q2 = jax.block_until_ready(noisy_q_forward(x2, a2, params))
    q2_ref = reference_forward(x2, a2, params)
    assert q2.shape == (B2, 1), q2.shape
    assert jnp.allclose(q2, q2_ref, rtol=1e-2, atol=1e-2), (q2, q2_ref)

    print("KERNEL_OK")
</pallas_src>

<mosaic_0001>
module attributes {stable_mosaic.version = 11 : i64} {
  func.func @_mlp_kernel(%arg0: i32, %arg1: memref<128x12xbf16, #tpu.memory_space<vmem>>, %arg2: memref<12x256xbf16, #tpu.memory_space<vmem>>, %arg3: memref<1x256xf32, #tpu.memory_space<vmem>>, %arg4: memref<256x256xbf16, #tpu.memory_space<vmem>>, %arg5: memref<1x256xf32, #tpu.memory_space<vmem>>, %arg6: memref<1x256xf32, #tpu.memory_space<vmem>>, %arg7: memref<1x1xf32, #tpu.memory_space<vmem>>, %arg8: memref<1x128xf32, #tpu.memory_space<vmem>>) attributes {dimension_semantics = [#tpu.dimension_semantics<parallel>], iteration_bounds = array<i64: 1>, scalar_prefetch = 0 : i64, scratch_operands = 0 : i64, tpu.core_type = #tpu.core_type<tc>, window_params = [{transform_indices = @transform_0, window_bounds = array<i64: 128, 12>}, {pipeline_mode = #tpu.pipeline_mode<synchronous>, transform_indices = @transform_1, window_bounds = array<i64: 12, 256>}, {pipeline_mode = #tpu.pipeline_mode<synchronous>, transform_indices = @transform_2, window_bounds = array<i64: 1, 256>}, {pipeline_mode = #tpu.pipeline_mode<synchronous>, transform_indices = @transform_3, window_bounds = array<i64: 256, 256>}, {pipeline_mode = #tpu.pipeline_mode<synchronous>, transform_indices = @transform_4, window_bounds = array<i64: 1, 256>}, {pipeline_mode = #tpu.pipeline_mode<synchronous>, transform_indices = @transform_5, window_bounds = array<i64: 1, 256>}, {pipeline_mode = #tpu.pipeline_mode<synchronous>, transform_indices = @transform_6, window_bounds = array<i64: 1, 1>}, {transform_indices = @transform_7, window_bounds = array<i64: 1, 128>}]} {
    %c0 = arith.constant 0 : index
    %c0_0 = arith.constant 0 : index
    %0 = vector.load %arg1[%c0, %c0_0] : memref<128x12xbf16, #tpu.memory_space<vmem>>, vector<128x12xbf16>
    %c0_1 = arith.constant 0 : index
    %c0_2 = arith.constant 0 : index
    %1 = vector.load %arg2[%c0_1, %c0_2] : memref<12x256xbf16, #tpu.memory_space<vmem>>, vector<12x256xbf16>
    %cst = arith.constant dense<0.000000e+00> : vector<128x256xf32>
    %2 = tpu.matmul %0, %1, %cst {dimension_numbers = #tpu.dot_dimension_numbers<[1], [0], [0], [1], [0, 0, 1, 1], [], []>} : vector<128x12xbf16>, vector<12x256xbf16>, vector<128x256xf32> -> vector<128x256xf32>
    %c0_3 = arith.constant 0 : index
    %c0_4 = arith.constant 0 : index
    %3 = vector.load %arg3[%c0_3, %c0_4] : memref<1x256xf32, #tpu.memory_space<vmem>>, vector<1x256xf32>
    %4 = vector.broadcast %3 : vector<1x256xf32> to vector<128x256xf32>
    %5 = arith.addf %2, %4 : vector<128x256xf32>
    %cst_5 = arith.constant 0.000000e+00 : f32
    %6 = vector.broadcast %cst_5 : f32 to vector<128x256xf32>
    %7 = arith.maximumf %5, %6 : vector<128x256xf32>
    %8 = arith.truncf %7 : vector<128x256xf32> to vector<128x256xbf16>
    %c0_6 = arith.constant 0 : index
    %c0_7 = arith.constant 0 : index
    %9 = vector.load %arg4[%c0_6, %c0_7] : memref<256x256xbf16, #tpu.memory_space<vmem>>, vector<256x256xbf16>
    %cst_8 = arith.constant dense<0.000000e+00> : vector<128x256xf32>
    %10 = tpu.matmul %8, %9, %cst_8 {dimension_numbers = #tpu.dot_dimension_numbers<[1], [0], [0], [1], [0, 0, 1, 1], [], []>} : vector<128x256xbf16>, vector<256x256xbf16>, vector<128x256xf32> -> vector<128x256xf32>
    %c0_9 = arith.constant 0 : index
    %c0_10 = arith.constant 0 : index
    %11 = vector.load %arg5[%c0_9, %c0_10] : memref<1x256xf32, #tpu.memory_space<vmem>>, vector<1x256xf32>
    %12 = vector.broadcast %11 : vector<1x256xf32> to vector<128x256xf32>
    %13 = arith.addf %10, %12 : vector<128x256xf32>
    %cst_11 = arith.constant 0.000000e+00 : f32
    %14 = vector.broadcast %cst_11 : f32 to vector<128x256xf32>
    %15 = arith.maximumf %13, %14 : vector<128x256xf32>
    %c0_12 = arith.constant 0 : index
    %c0_13 = arith.constant 0 : index
    %16 = vector.load %arg6[%c0_12, %c0_13] : memref<1x256xf32, #tpu.memory_space<vmem>>, vector<1x256xf32>
    %cst_14 = arith.constant dense<0.000000e+00> : vector<1x128xf32>
    %17 = tpu.matmul %16, %15, %cst_14 {dimension_numbers = #tpu.dot_dimension_numbers<[1], [1], [0], [0], [0, 0, 1, 0], [], []>} : vector<1x256xf32>, vector<128x256xf32>, vector<1x128xf32> -> vector<1x128xf32>
    %c0_15 = arith.constant 0 : index
    %c0_16 = arith.constant 0 : index
    %18 = vector.load %arg7[%c0_15, %c0_16] : memref<1x1xf32, #tpu.memory_space<vmem>>, vector<1x1xf32>
    %19 = vector.broadcast %18 : vector<1x1xf32> to vector<1x128xf32>
    %20 = arith.addf %17, %19 : vector<1x128xf32>
    %c0_17 = arith.constant 0 : index
    %c0_18 = arith.constant 0 : index
    %21 = vector.load %arg8[%c0_17, %c0_18] : memref<1x128xf32, #tpu.memory_space<vmem>>, vector<1x128xf32>
    tpu.vector_store %arg8[%c0_17, %c0_18], %20 {strides = array<i32>} : memref<1x128xf32, #tpu.memory_space<vmem>>, vector<1x128xf32>,
    return
  }
  func.func @transform_0(%arg0: i32) -> (i32, i32) {
    %c0_i32 = arith.constant 0 : i32
    %c0_i32_0 = arith.constant 0 : i32
    return %arg0, %c0_i32 : i32, i32
  }
  func.func @transform_1(%arg0: i32) -> (i32, i32) {
    %c0_i32 = arith.constant 0 : i32
    %c0_i32_0 = arith.constant 0 : i32
    %c0_i32_1 = arith.constant 0 : i32
    return %c0_i32, %c0_i32_0 : i32, i32
  }
  func.func @transform_2(%arg0: i32) -> (i32, i32) {
    %c0_i32 = arith.constant 0 : i32
    %c0_i32_0 = arith.constant 0 : i32
    %c0_i32_1 = arith.constant 0 : i32
    return %c0_i32, %c0_i32_0 : i32, i32
  }
  func.func @transform_3(%arg0: i32) -> (i32, i32) {
    %c0_i32 = arith.constant 0 : i32
    %c0_i32_0 = arith.constant 0 : i32
    %c0_i32_1 = arith.constant 0 : i32
    return %c0_i32, %c0_i32_0 : i32, i32
  }
  func.func @transform_4(%arg0: i32) -> (i32, i32) {
    %c0_i32 = arith.constant 0 : i32
    %c0_i32_0 = arith.constant 0 : i32
    %c0_i32_1 = arith.constant 0 : i32
    return %c0_i32, %c0_i32_0 : i32, i32
  }
  func.func @transform_5(%arg0: i32) -> (i32, i32) {
    %c0_i32 = arith.constant 0 : i32
    %c0_i32_0 = arith.constant 0 : i32
    %c0_i32_1 = arith.constant 0 : i32
    return %c0_i32, %c0_i32_0 : i32, i32
  }
  func.func @transform_6(%arg0: i32) -> (i32, i32) {
    %c0_i32 = arith.constant 0 : i32
    %c0_i32_0 = arith.constant 0 : i32
    %c0_i32_1 = arith.constant 0 : i32
    return %c0_i32, %c0_i32_0 : i32, i32
  }
  func.func @transform_7(%arg0: i32) -> (i32, i32) {
    %c0_i32 = arith.constant 0 : i32
    %c0_i32_0 = arith.constant 0 : i32
    return %c0_i32, %arg0 : i32, i32
  }
}

</mosaic_0001>

<bundles_post_ra>
// kernel: tpu_custom_call.1
= control target key start
LH: loop header
LB: loop body
LE: loop exit
PB: predicated region body
PF: predicated region fallthrough
CT: control target
= control target key end

     0   :  { %s1177_s0 = inlined_call_operand.vmem [shape: bf16[128,12], index: 0, kind: input, shape index: {}]   ;;  %s1178_s1 = inlined_call_operand.vmem [shape: bf16[12,256], index: 1, kind: input, shape index: {}]   ;;  %s1179_s2 = inlined_call_operand.vmem [shape: f32[1,256], index: 2, kind: input, shape index: {}]   ;;  %s1180_s3 = inlined_call_operand.hbm [shape: bf16[256,256], index: 3, kind: input, shape index: {}]   ;;  %s1181_s4 = inlined_call_operand.vmem [shape: f32[1,256], index: 4, kind: input, shape index: {}]   ;;  %s1182_s5 = inlined_call_operand.vmem [shape: f32[1,256], index: 5, kind: input, shape index: {}]   ;;  %s1183_s6 = inlined_call_operand.<no memory space> [shape: f32[1,1], index: 6, kind: input, shape index: {}]   ;;  %s1184_s7 = inlined_call_operand.hbm [shape: f32[1,128], index: 7, kind: output, shape index: {}]  }
   0x1   :  { %v12_v0 = vstv %s1183_s6 }
   0x2   :  { %13 = vst [vmem:[#allocation2] sm:$0x1] %v12_v0 }
   0x3   :  { %14 = vsyncpa [#allocation4], 0 }
   0x4   :  { %15 = vsyncpa [#allocation5], 0  ;;  %s932_s26 = smov [#allocation3]  }
   0x5   :  { %s27_s27 = sshll.u32 %s932_s26, 4  ;;  %s28_s27 = int_to_ptr.vmem [resolvable:$true] %s27_s27 }
   0x6   :  { %s896_s28 = scalar_lea.vmem %s28_s27, 4096  ;;  %p901_p1 = scmp.lt.s32.totalorder %s28_s27, %s28_s27 }
   0x7   :  { %p897_p0 = scmp.ne.s32.totalorder %s28_s27, %s896_s28  ;;  %p902_p2 = scmp.lt.s32.totalorder %s896_s28, %s896_s28 }
   0x9   :  { %p903_p3 = por %p902_p2, %p901_p1 }
   0xb   :  { %p904_p4 = pnand %p903_p3, %p897_p0 }
   0xd   :  { %907 = shalt.err (!%p904_p4)
}
   0xe   :  { %s933_s29 = smov 128   ;;  %s934_s30 = smov 8  }
   0xf   :  { %33 = dma.hbm_to_vmem [thread:$0]  %s1180_s3, 4096, %s28_s27, [#allocation4], %s933_s29, %s933_s29, %s934_s30  }
  0x10   :  { %928 = dma.done.wait [#allocation4], 4096  }
  0x11   :  { %929 = vsyncadd [#allocation4], 4294963200  ;;  %v935_v1 = vmov 0   ;;  %vm147_vm0 = vcmask 1045504   ;;  %v832_v5 = vld [vmem:[%s1177_s0] sm:$0xff]   ;;  %vm122_vm1 = vcmask 97280   ;;  %v64_v45 = vlaneseq }
  0x12   :  { %186 = vmatprep.mubr.bf16.mxu0 %v935_v1  ;;  %828 = vset.pattern.permute.xlu0 %v935_v1  ;;  %v829_v2 = vld [vmem:[%s1178_s1 + $0x4] ss:$8 sps:$4 sm:$0x3f]   ;;  %v831_v3 = vld [vmem:[%s1178_s1] ss:$8 sps:$4 sm:$0x3f]  }
  0x13   :  { %782 = vmatprep.subr.msk.bf16.mxu0 %vm147_vm0, %v829_v2  ;;  %v149_v4 = vsel %vm147_vm0, %v831_v3, 0  ;;  %v840_v6 = vld [vmem:[#allocation3 + $0x74] ss:$8 sps:$4 sm:$0xff]   ;;  %v842_v7 = vld [vmem:[#allocation3 + $0x70] ss:$8 sps:$4 sm:$0xff]   ;;  %v833_v8 = vld [vmem:[%s1177_s0 + $0x8] sm:$0xff]  }
  0x14   :  { %169 = vmatpush1.bf16.msra.mxu0 %v149_v4  ;;  %v843_v9 = vld [vmem:[#allocation3 + $0x64] ss:$8 sps:$4 sm:$0xff]   ;;  %519 = vmatprep.subr.bf16.mxu1 %v840_v6  ;;  %v845_v10 = vld [vmem:[#allocation3 + $0x60] ss:$8 sps:$4 sm:$0xff]   ;;  %v846_v11 = vld [vmem:[#allocation3 + $0x54] ss:$8 sps:$4 sm:$0xff]  }
  0x15   :  { %520 = vmatpush1.bf16.msra.mxu1 %v842_v7  ;;  %v848_v12 = vld [vmem:[#allocation3 + $0x50] ss:$8 sps:$4 sm:$0xff]   ;;  %v849_v13 = vld [vmem:[#allocation3 + $0x44] ss:$8 sps:$4 sm:$0xff]   ;;  %v851_v15 = vld [vmem:[#allocation3 + $0x40] ss:$8 sps:$4 sm:$0xff]  }
  0x16   :  { %521 = vmatprep.subr.bf16.mxu1 %v843_v9  ;;  %v834_v14 = vld [vmem:[%s1177_s0 + $0x10] sm:$0xff]   ;;  %v835_v18 = vld [vmem:[%s1177_s0 + $0x18] sm:$0xff]   ;;  %v857_v20 = vld [vmem:[#allocation3 + $0x20] ss:$8 sps:$4 sm:$0xff]   ;;  %v65_v46 = vshrl.u32 %v64_v45, 7 }
  0x17   :  { %783 = vmatmul.mubr.msk.bf16.vlgmr.msra.gmra.mxu0 %vm122_vm1, %v832_v5  ;;  %v852_v16 = vld [vmem:[#allocation3 + $0x34] ss:$8 sps:$4 sm:$0xff]   ;;  %v854_v17 = vld [vmem:[#allocation3 + $0x30] ss:$8 sps:$4 sm:$0xff]   ;;  %v855_v19 = vld [vmem:[#allocation3 + $0x24] ss:$8 sps:$4 sm:$0xff]  }
  0x18   :  { %196 = vmatprep.mubr.bf16.mxu0 %v935_v1  ;;  %v858_v21 = vld [vmem:[#allocation3 + $0x14] ss:$8 sps:$4 sm:$0xff]   ;;  %v860_v22 = vld [vmem:[#allocation3 + $0x10] ss:$8 sps:$4 sm:$0xff]   ;;  %v861_v23 = vld [vmem:[#allocation3 + $0x4] ss:$8 sps:$4 sm:$0xff]  }
  0x19   :  { %522 = vmatpush1.bf16.msra.mxu1 %v845_v10  ;;  %v836_v24 = vld [vmem:[%s1177_s0 + $0x20] sm:$0xff]   ;;  %v866_v27 = vld [vmem:[#allocation3 + $0xf0] ss:$8 sps:$4 sm:$0xff]   ;;  %v837_v29 = vld [vmem:[%s1177_s0 + $0x28] sm:$0xff]   ;;  %v1030_v47 = vsub.s32 1, %v65_v46  ;;  %v1032_v48 = vsub.s32 0, %v65_v46 }
  0x1a   :  { %523 = vmatprep.subr.bf16.mxu1 %v846_v11  ;;  %v863_v25 = vld [vmem:[#allocation3] ss:$8 sps:$4 sm:$0xff]   ;;  %v864_v26 = vld [vmem:[#allocation3 + $0xf4] ss:$8 sps:$4 sm:$0xff]   ;;  %v867_v28 = vld [vmem:[#allocation3 + $0xe4] ss:$8 sps:$4 sm:$0xff]  }
  0x1b   :  { %v869_v30 = vld [vmem:[#allocation3 + $0xe0] ss:$8 sps:$4 sm:$0xff]   ;;  %v870_v31 = vld [vmem:[#allocation3 + $0xd4] ss:$8 sps:$4 sm:$0xff]   ;;  %v872_v32 = vld [vmem:[#allocation3 + $0xd0] ss:$8 sps:$4 sm:$0xff]  }
  0x1c   :  { %v873_v33 = vld [vmem:[#allocation3 + $0xc4] ss:$8 sps:$4 sm:$0xff]   ;;  %v875_v35 = vld [vmem:[#allocation3 + $0xc0] ss:$8 sps:$4 sm:$0xff]   ;;  %v876_v36 = vld [vmem:[#allocation3 + $0xb4] ss:$8 sps:$4 sm:$0xff]  }
  0x1d   :  { %524 = vmatpush1.bf16.msra.mxu1 %v848_v12  ;;  %v838_v34 = vld [vmem:[%s1177_s0 + $0x30] sm:$0xff]   ;;  %v839_v38 = vld [vmem:[%s1177_s0 + $0x38] sm:$0xff]   ;;  %v881_v40 = vld [vmem:[#allocation3 + $0xa0] ss:$8 sps:$4 sm:$0xff]  }
  0x1e   :  { %525 = vmatprep.subr.bf16.mxu1 %v849_v13  ;;  %v878_v37 = vld [vmem:[#allocation3 + $0xb0] ss:$8 sps:$4 sm:$0xff]   ;;  %v879_v39 = vld [vmem:[#allocation3 + $0xa4] ss:$8 sps:$4 sm:$0xff]   ;;  %v882_v41 = vld [vmem:[#allocation3 + $0x94] ss:$8 sps:$4 sm:$0xff]  }
  0x1f   :  { %784 = vmatmul.mubr.msk.bf16.gmra.mxu0 %vm122_vm1, %v833_v8  ;;  %v884_v42 = vld [vmem:[#allocation3 + $0x90] ss:$8 sps:$4 sm:$0xff]   ;;  %v885_v43 = vld [vmem:[#allocation3 + $0x84] ss:$8 sps:$4 sm:$0xff]   ;;  %v887_v44 = vld [vmem:[#allocation3 + $0x80] ss:$8 sps:$4 sm:$0xff]  }
  0x20   :  { %206 = vmatprep.mubr.bf16.mxu0 %v935_v1  ;;  %v62_v49 = vld [vmem:[%s1179_s2] sm:$0x3] }
  0x21   :  { %526 = vmatpush1.bf16.msra.mxu1 %v851_v15  ;;  %v1038_v51 = vrot.slane %v62_v49, %v1030_v47  ;;  %v1041_v52 = vrot.slane %v62_v49, %v1032_v48 }
  0x22   :  { %527 = vmatprep.subr.bf16.mxu1 %v852_v16 }
  0x25   :  { %528 = vmatpush1.bf16.msra.mxu1 %v854_v17 }
  0x26   :  { %529 = vmatprep.subr.bf16.mxu1 %v855_v19 }
  0x27   :  { %785 = vmatmul.mubr.msk.bf16.gmra.mxu0 %vm122_vm1, %v834_v14 }
  0x28   :  { %216 = vmatprep.mubr.bf16.mxu0 %v935_v1 }
  0x29   :  { %530 = vmatpush1.bf16.msra.mxu1 %v857_v20 }
  0x2a   :  { %531 = vmatprep.subr.bf16.mxu1 %v858_v21 }
  0x2d   :  { %532 = vmatpush1.bf16.msra.mxu1 %v860_v22 }
  0x2e   :  { %533 = vmatprep.subr.bf16.mxu1 %v861_v23 }
  0x2f   :  { %786 = vmatmul.mubr.msk.bf16.gmra.mxu0 %vm122_vm1, %v835_v18 }
  0x30   :  { %226 = vmatprep.mubr.bf16.mxu0 %v935_v1 }
  0x31   :  { %534 = vmatpush1.bf16.msra.mxu1 %v863_v25 }
  0x32   :  { %535 = vmatprep.subr.bf16.mxu1 %v864_v26 }
  0x35   :  { %536 = vmatpush2.bf16.msra.mxu1 %v866_v27 }
  0x36   :  { %537 = vmatprep.subr.bf16.mxu1 %v867_v28 }
  0x37   :  { %787 = vmatmul.mubr.msk.bf16.gmra.mxu0 %vm122_vm1, %v836_v24 }
  0x38   :  { %236 = vmatprep.mubr.bf16.mxu0 %v935_v1 }
  0x39   :  { %538 = vmatpush2.bf16.msra.mxu1 %v869_v30 }
  0x3a   :  { %539 = vmatprep.subr.bf16.mxu1 %v870_v31 }
  0x3d   :  { %540 = vmatpush2.bf16.msra.mxu1 %v872_v32 }
  0x3e   :  { %541 = vmatprep.subr.bf16.mxu1 %v873_v33 }
  0x3f   :  { %788 = vmatmul.mubr.msk.bf16.gmra.mxu0 %vm122_vm1, %v837_v29 }
  0x40   :  { %246 = vmatprep.mubr.bf16.mxu0 %v935_v1 }
  0x41   :  { %542 = vmatpush2.bf16.msra.mxu1 %v875_v35 }
  0x42   :  { %543 = vmatprep.subr.bf16.mxu1 %v876_v36 }
  0x45   :  { %544 = vmatpush2.bf16.msra.mxu1 %v878_v37 }
  0x46   :  { %545 = vmatprep.subr.bf16.mxu1 %v879_v39 }
  0x47   :  { %789 = vmatmul.mubr.msk.bf16.gmra.mxu0 %vm122_vm1, %v838_v34 }
  0x48   :  { %256 = vmatprep.mubr.bf16.mxu0 %v935_v1 }
  0x49   :  { %546 = vmatpush2.bf16.msra.mxu1 %v881_v40 }
  0x4a   :  { %547 = vmatprep.subr.bf16.mxu1 %v882_v41 }
  0x4d   :  { %548 = vmatpush2.bf16.msra.mxu1 %v884_v42 }
  0x4e   :  { %549 = vmatprep.subr.bf16.mxu1 %v885_v43 }
  0x4f   :  { %790 = vmatmul.mubr.msk.bf16.gmra.mxu0 %vm122_vm1, %v839_v38 }
  0x51   :  { %550 = vmatpush2.bf16.msra.mxu1 %v887_v44 }
  0xd7   :  { %v188_v50 = vpop.f32.mrf.mxu0 }
  0xd8   :  { %v189_v57 = vadd.f32 %v188_v50, %v1041_v52 }
  0xd9   :  { %v190_v53 = vpop.f32.mrf.mxu0 }
  0xda   :  { %v191_v55 = vadd.f32 %v190_v53, %v1038_v51  ;;  %v267_v0 = vmax.f32 %v189_v57, 0.0 }
  0xdb   :  { %v192_v54 = vpop.f32.mrf.mxu0 }
  0xdc   :  { %v193_v56 = vadd.f32 %v192_v54, %v1041_v52  ;;  %v268_v62 = vmax.f32 %v191_v55, 0.0 }
  0xdd   :  { %v194_v58 = vpop.f32.mrf.mxu0 }
  0xde   :  { %v195_v59 = vadd.f32 %v194_v58, %v1038_v51  ;;  %v269_v60 = vmax.f32 %v193_v56, 0.0 }
  0xdf   :  { %v198_v61 = vpop.f32.mrf.mxu0 }
  0xe0   :  { %v270_v63 = vmax.f32 %v195_v59, 0.0  ;;  %v299_v3 = vpack.c.bf16 %v269_v60, %v267_v0  ;;  %v199_v7 = vadd.f32 %v198_v61, %v1041_v52 }
  0xe1   :  { %v200_v1 = vpop.f32.mrf.mxu0 }
  0xe2   :  { %v300_v2 = vpack.c.bf16 %v270_v63, %v268_v62  ;;  %v201_v5 = vadd.f32 %v200_v1, %v1038_v51  ;;  %v271_v14 = vmax.f32 %v199_v7, 0.0 }
  0xe3   :  { %v202_v4 = vpop.f32.mrf.mxu0 }
  0xe4   :  { %v203_v6 = vadd.f32 %v202_v4, %v1041_v52  ;;  %551 = vmatprep.mubr.bf16.mxu1 %v300_v2  ;;  %v272_v12 = vmax.f32 %v201_v5, 0.0 }
  0xe5   :  { %v204_v8 = vpop.f32.mrf.mxu0  ;;  %552 = vmatmul.mubr.bf16.vlgmr.msra.gmra.mxu1 %v299_v3 }
  0xe6   :  { %v205_v9 = vadd.f32 %v204_v8, %v1038_v51  ;;  %v273_v10 = vmax.f32 %v203_v6, 0.0 }
  0xe7   :  { %v208_v11 = vpop.f32.mrf.mxu0 }
  0xe8   :  { %v274_v13 = vmax.f32 %v205_v9, 0.0  ;;  %v301_v17 = vpack.c.bf16 %v273_v10, %v271_v14  ;;  %v209_v21 = vadd.f32 %v208_v11, %v1041_v52 }
  0xe9   :  { %v210_v15 = vpop.f32.mrf.mxu0 }
  0xea   :  { %v302_v16 = vpack.c.bf16 %v274_v13, %v272_v12  ;;  %v211_v19 = vadd.f32 %v210_v15, %v1038_v51  ;;  %v275_v28 = vmax.f32 %v209_v21, 0.0 }
  0xeb   :  { %v212_v18 = vpop.f32.mrf.mxu0 }
  0xec   :  { %v213_v20 = vadd.f32 %v212_v18, %v1041_v52  ;;  %561 = vmatprep.mubr.bf16.mxu1 %v302_v16  ;;  %v276_v26 = vmax.f32 %v211_v19, 0.0 }
  0xed   :  { %v214_v22 = vpop.f32.mrf.mxu0  ;;  %562 = vmatmul.mubr.bf16.gmra.mxu1 %v301_v17 }
  0xee   :  { %v215_v23 = vadd.f32 %v214_v22, %v1038_v51  ;;  %v277_v24 = vmax.f32 %v213_v20, 0.0 }
  0xef   :  { %v218_v25 = vpop.f32.mrf.mxu0 }
  0xf0   :  { %v278_v27 = vmax.f32 %v215_v23, 0.0  ;;  %v303_v31 = vpack.c.bf16 %v277_v24, %v275_v28  ;;  %v219_v35 = vadd.f32 %v218_v25, %v1041_v52 }
  0xf1   :  { %v220_v29 = vpop.f32.mrf.mxu0 }
  0xf2   :  { %v304_v30 = vpack.c.bf16 %v278_v27, %v276_v26  ;;  %v221_v33 = vadd.f32 %v220_v29, %v1038_v51  ;;  %v279_v42 = vmax.f32 %v219_v35, 0.0 }
  0xf3   :  { %v222_v32 = vpop.f32.mrf.mxu0 }
  0xf4   :  { %v223_v34 = vadd.f32 %v222_v32, %v1041_v52  ;;  %571 = vmatprep.mubr.bf16.mxu1 %v304_v30  ;;  %v280_v40 = vmax.f32 %v221_v33, 0.0 }
  0xf5   :  { %v224_v36 = vpop.f32.mrf.mxu0  ;;  %572 = vmatmul.mubr.bf16.gmra.mxu1 %v303_v31 }
  0xf6   :  { %v225_v37 = vadd.f32 %v224_v36, %v1038_v51  ;;  %v281_v38 = vmax.f32 %v223_v34, 0.0 }
  0xf7   :  { %v228_v39 = vpop.f32.mrf.mxu0 }
  0xf8   :  { %v282_v41 = vmax.f32 %v225_v37, 0.0  ;;  %v305_v45 = vpack.c.bf16 %v281_v38, %v279_v42  ;;  %v229_v53 = vadd.f32 %v228_v39, %v1041_v52 }
  0xf9   :  { %v230_v43 = vpop.f32.mrf.mxu0 }
  0xfa   :  { %v306_v44 = vpack.c.bf16 %v282_v41, %v280_v40  ;;  %v231_v49 = vadd.f32 %v230_v43, %v1038_v51  ;;  %v283_v60 = vmax.f32 %v229_v53, 0.0  ;;  %v1078_v40 = vld [vmem:[%s1182_s5] sm:$0x3] }
  0xfb   :  { %v232_v46 = vpop.f32.mrf.mxu0 }
  0xfc   :  { %v233_v50 = vadd.f32 %v232_v46, %v1041_v52  ;;  %581 = vmatprep.mubr.bf16.mxu1 %v306_v44  ;;  %v284_v58 = vmax.f32 %v231_v49, 0.0 }
  0xfd   :  { %v234_v54 = vpop.f32.mrf.mxu0  ;;  %582 = vmatmul.mubr.bf16.gmra.mxu1 %v305_v45 }
  0xfe   :  { %v235_v55 = vadd.f32 %v234_v54, %v1038_v51  ;;  %v285_v56 = vmax.f32 %v233_v50, 0.0 }
  0xff   :  { %v238_v57 = vpop.f32.mrf.mxu0 }
 0x100   :  { %v286_v59 = vmax.f32 %v235_v55, 0.0  ;;  %v307_v63 = vpack.c.bf16 %v285_v56, %v283_v60  ;;  %v239_v3 = vadd.f32 %v238_v57, %v1041_v52 }
 0x101   :  { %v240_v61 = vpop.f32.mrf.mxu0 }
 0x102   :  { %v308_v62 = vpack.c.bf16 %v286_v59, %v284_v58  ;;  %v241_v1 = vadd.f32 %v240_v61, %v1038_v51  ;;  %v287_v10 = vmax.f32 %v239_v3, 0.0 }
 0x103   :  { %v242_v0 = vpop.f32.mrf.mxu0 }
 0x104   :  { %v243_v2 = vadd.f32 %v242_v0, %v1041_v52  ;;  %591 = vmatprep.mubr.bf16.mxu1 %v308_v62  ;;  %v288_v8 = vmax.f32 %v241_v1, 0.0 }
 0x105   :  { %v244_v4 = vpop.f32.mrf.mxu0  ;;  %592 = vmatmul.mubr.bf16.gmra.mxu1 %v307_v63 }
 0x106   :  { %v245_v5 = vadd.f32 %v244_v4, %v1038_v51  ;;  %v289_v6 = vmax.f32 %v243_v2, 0.0 }
 0x107   :  { %v248_v7 = vpop.f32.mrf.mxu0 }
 0x108   :  { %v290_v9 = vmax.f32 %v245_v5, 0.0  ;;  %v309_v13 = vpack.c.bf16 %v289_v6, %v287_v10  ;;  %v249_v17 = vadd.f32 %v248_v7, %v1041_v52  ;;  %v347_v10 = vld [vmem:[%s1181_s4] sm:$0x3]  ;;  %s936_s4 = smov [#allocation6]  }
 0x109   :  { %v250_v11 = vpop.f32.mrf.mxu0  ;;  %s763_s30 = sshll.u32 %s936_s4, 4  ;;  %s764_s30 = int_to_ptr.vmem [resolvable:$true] %s763_s30 }
 0x10a   :  { %v310_v12 = vpack.c.bf16 %v290_v9, %v288_v8  ;;  %v251_v15 = vadd.f32 %v250_v11, %v1038_v51  ;;  %v291_v24 = vmax.f32 %v249_v17, 0.0  ;;  %s908_s8 = scalar_lea.vmem %s764_s30, 16  ;;  %s912_s9 = scalar_lea.vmem %s764_s30, 32 }
 0x10b   :  { %v252_v14 = vpop.f32.mrf.mxu0  ;;  %p909_p5 = scmp.ne.s32.totalorder %s764_s30, %s908_s8  ;;  %p913_p6 = scmp.lt.s32.totalorder %s764_s30, %s764_s30 }
 0x10c   :  { %v253_v16 = vadd.f32 %v252_v14, %v1041_v52  ;;  %601 = vmatprep.mubr.bf16.mxu1 %v310_v12  ;;  %v292_v22 = vmax.f32 %v251_v15, 0.0  ;;  %v1118_v12 = vrot.slane %v347_v10, %v1032_v48  ;;  %v1121_v14 = vrot.slane %v347_v10, %v1030_v47  ;;  %p914_p7 = scmp.lt.s32.totalorder %s912_s9, %s908_s8 }
 0x10d   :  { %v254_v18 = vpop.f32.mrf.mxu0  ;;  %602 = vmatmul.mubr.bf16.gmra.mxu1 %v309_v13 }
 0x10e   :  { %v255_v19 = vadd.f32 %v254_v18, %v1038_v51  ;;  %v293_v20 = vmax.f32 %v253_v16, 0.0  ;;  %p915_p8 = por %p914_p7, %p913_p6 }
 0x10f   :  { %v258_v21 = vpop.f32.mrf.mxu0 }
 0x110   :  { %v294_v23 = vmax.f32 %v255_v19, 0.0  ;;  %v311_v27 = vpack.c.bf16 %v293_v20, %v291_v24  ;;  %v259_v31 = vadd.f32 %v258_v21, %v1041_v52  ;;  %p916_p9 = pnand %p915_p8, %p909_p5 }
 0x111   :  { %v260_v25 = vpop.f32.mrf.mxu0 }
 0x112   :  { %v312_v26 = vpack.c.bf16 %v294_v23, %v292_v22  ;;  %v261_v29 = vadd.f32 %v260_v25, %v1038_v51  ;;  %v295_v37 = vmax.f32 %v259_v31, 0.0 }
 0x113   :  { %v262_v28 = vpop.f32.mrf.mxu0 }
 0x114   :  { %v263_v30 = vadd.f32 %v262_v28, %v1041_v52  ;;  %611 = vmatprep.mubr.bf16.mxu1 %v312_v26  ;;  %v296_v35 = vmax.f32 %v261_v29, 0.0  ;;  %v683_v52 = vrot.slane %v1078_v40, %v1030_v47 }
 0x115   :  { %v264_v32 = vpop.f32.mrf.mxu0  ;;  %612 = vmatmul.mubr.bf16.gmra.mxu1 %v311_v27 }
 0x116   :  { %v265_v33 = vadd.f32 %v264_v32, %v1038_v51  ;;  %v297_v34 = vmax.f32 %v263_v30, 0.0  ;;  %750 = vmatprep.mubr.f32.mxu0 %v683_v52  ;;  %v665_v51 = vld [vmem:[#allocation2] sm:$0x1] }
 0x117   :  { %668 = vperm.xlu0 %828, %v665_v51  }
 0x118   :  { %v298_v36 = vmax.f32 %v265_v33, 0.0  ;;  %v313_v39 = vpack.c.bf16 %v297_v34, %v295_v37 }
 0x11a   :  { %v314_v38 = vpack.c.bf16 %v298_v36, %v296_v35 }
 0x11c   :  { %621 = vmatprep.mubr.bf16.mxu1 %v314_v38 }
 0x11d   :  { %622 = vmatmul.mubr.bf16.gmra.mxu1 %v313_v39 }
 0x1a5   :  { %v1080_v41 = vpop.f32.mrf.mxu1 }
 0x1a7   :  { %v1084_v42 = vpop.f32.mrf.mxu1 }
 0x1a9   :  { %v1086_v43 = vpop.f32.mrf.mxu1 }
 0x1ab   :  { %v1088_v44 = vpop.f32.mrf.mxu1 }
 0x1ad   :  { %v1090_v45 = vpop.f32.mrf.mxu1 }
 0x1af   :  { %v1092_v46 = vpop.f32.mrf.mxu1 }
 0x1b1   :  { %v1094_v49 = vpop.f32.mrf.mxu1 }
 0x1b3   :  { %v1096_v50 = vpop.f32.mrf.mxu1 }
 0x1b5   :  { %v1098_v53 = vpop.f32.mrf.mxu1 }
 0x1b7   :  { %v1100_v54 = vpop.f32.mrf.mxu1 }
 0x1b9   :  { %v1102_v55 = vpop.f32.mrf.mxu1 }
 0x1bb   :  { %v1104_v56 = vpop.f32.mrf.mxu1 }
 0x1bd   :  { %v1106_v57 = vpop.f32.mrf.mxu1 }
 0x1bf   :  { %v1108_v58 = vpop.f32.mrf.mxu1 }
 0x1c1   :  { %v1110_v59 = vpop.f32.mrf.mxu1 }
 0x1c3   :  { %v1112_v60 = vpop.f32.mrf.mxu1 }
 0x1c5   :  { %v593_v61 = vpop.f32.mrf.mxu1 }
 0x1c7   :  { %v595_v62 = vpop.f32.mrf.mxu1 }
 0x1c8   :  { %v596_v51 = vadd.f32 %v595_v62, %v1121_v14 }
 0x1c9   :  { %v597_v63 = vpop.f32.mrf.mxu1 }
 0x1ca   :  { %v598_v39 = vadd.f32 %v597_v63, %v1118_v12  ;;  %v586_v63 = vadd.f32 %v1108_v58, %v1121_v14  ;;  %v576_v58 = vadd.f32 %v1100_v54, %v1121_v14  ;;  %v566_v54 = vadd.f32 %v1092_v46, %v1121_v14 }
 0x1cb   :  { %v599_v0 = vpop.f32.mrf.mxu1  ;;  %v556_v46 = vadd.f32 %v1084_v42, %v1121_v14 }
 0x1cc   :  { %v600_v37 = vadd.f32 %v599_v0, %v1121_v14  ;;  %v588_v0 = vadd.f32 %v1110_v59, %v1118_v12  ;;  %v578_v59 = vadd.f32 %v1102_v55, %v1118_v12  ;;  %v568_v55 = vadd.f32 %v1094_v49, %v1118_v12 }
 0x1cd   :  { %v603_v1 = vpop.f32.mrf.mxu1  ;;  %v558_v49 = vadd.f32 %v1086_v43, %v1118_v12  ;;  %v669_v43 = vpop.permute.xlu0 %668 }
 0x1ce   :  { %v604_v35 = vadd.f32 %v603_v1, %v1118_v12  ;;  %v590_v1 = vadd.f32 %v1112_v60, %v1121_v14  ;;  %v580_v60 = vadd.f32 %v1104_v56, %v1121_v14  ;;  %v570_v56 = vadd.f32 %v1096_v50, %v1121_v14 }
 0x1cf   :  { %v605_v2 = vpop.f32.mrf.mxu1  ;;  %v560_v50 = vadd.f32 %v1088_v44, %v1121_v14 }
 0x1d0   :  { %v606_v33 = vadd.f32 %v605_v2, %v1121_v14  ;;  %v652_v52 = vmax.f32 %v604_v35, 0.0  ;;  %v594_v2 = vadd.f32 %v593_v61, %v1118_v12  ;;  %v647_v62 = vmax.f32 %v590_v1, 0.0 }
 0x1d1   :  { %v607_v3 = vpop.f32.mrf.mxu1  ;;  %v584_v61 = vadd.f32 %v1106_v57, %v1118_v12  ;;  %v643_v10 = vmax.f32 %v580_v60, 0.0  ;;  %v574_v57 = vadd.f32 %v1098_v53, %v1118_v12  ;;  %v564_v53 = vadd.f32 %v1090_v45, %v1118_v12 }
 0x1d2   :  { %v608_v31 = vadd.f32 %v607_v3, %v1118_v12  ;;  %v653_v38 = vmax.f32 %v606_v33, 0.0  ;;  %v651_v3 = vmax.f32 %v600_v37, 0.0  ;;  %v554_v45 = vadd.f32 %v1080_v41, %v1118_v12 }
 0x1d3   :  { %v609_v4 = vpop.f32.mrf.mxu1 }
 0x1d4   :  { %v610_v29 = vadd.f32 %v609_v4, %v1121_v14  ;;  %v654_v36 = vmax.f32 %v608_v31, 0.0  ;;  %v650_v4 = vmax.f32 %v598_v39, 0.0  ;;  %v632_v44 = vmax.f32 %v554_v45, 0.0 }
 0x1d5   :  { %v613_v5 = vpop.f32.mrf.mxu1 }
 0x1d6   :  { %v614_v27 = vadd.f32 %v613_v5, %v1118_v12  ;;  %v655_v34 = vmax.f32 %v610_v29, 0.0  ;;  %v649_v5 = vmax.f32 %v596_v51, 0.0 }
 0x1d7   :  { %v615_v6 = vpop.f32.mrf.mxu1 }
 0x1d8   :  { %v616_v25 = vadd.f32 %v615_v6, %v1121_v14  ;;  %v656_v32 = vmax.f32 %v614_v27, 0.0  ;;  %v648_v6 = vmax.f32 %v594_v2, 0.0 }
 0x1d9   :  { %v617_v7 = vpop.f32.mrf.mxu1 }
 0x1da   :  { %v618_v47 = vadd.f32 %v617_v7, %v1118_v12  ;;  %v657_v30 = vmax.f32 %v616_v25, 0.0  ;;  %v646_v7 = vmax.f32 %v588_v0, 0.0 }
 0x1db   :  { %v619_v8 = vpop.f32.mrf.mxu1 }
 0x1dc   :  { %v620_v22 = vadd.f32 %v619_v8, %v1121_v14  ;;  %v658_v28 = vmax.f32 %v618_v47, 0.0  ;;  %v645_v8 = vmax.f32 %v586_v63, 0.0  ;;  %v674_v47 = vrot.slane %v669_v43, %v1032_v48 }
 0x1dd   :  { %v623_v9 = vpop.f32.mrf.mxu1 }
 0x1de   :  { %v624_v20 = vadd.f32 %v623_v9, %v1118_v12  ;;  %v659_v26 = vmax.f32 %v620_v22, 0.0  ;;  %v644_v9 = vmax.f32 %v584_v61, 0.0  ;;  %v633_v22 = vmax.f32 %v556_v46, 0.0 }
 0x1df   :  { %v625_v11 = vpop.f32.mrf.mxu1 }
 0x1e0   :  { %v626_v17 = vadd.f32 %v625_v11, %v1121_v14  ;;  %v660_v24 = vmax.f32 %v624_v20, 0.0  ;;  %v642_v11 = vmax.f32 %v578_v59, 0.0  ;;  %v635_v20 = vmax.f32 %v560_v50, 0.0 }
 0x1e1   :  { %v627_v13 = vpop.f32.mrf.mxu1 }
 0x1e2   :  { %v628_v15 = vadd.f32 %v627_v13, %v1118_v12  ;;  %v661_v23 = vmax.f32 %v626_v17, 0.0  ;;  %v641_v13 = vmax.f32 %v576_v58, 0.0  ;;  %v638_v17 = vmax.f32 %v568_v55, 0.0 }
 0x1e3   :  { %v629_v16 = vpop.f32.mrf.mxu1 }
 0x1e4   :  { %v630_v18 = vadd.f32 %v629_v16, %v1121_v14  ;;  %v662_v21 = vmax.f32 %v628_v15, 0.0  ;;  %v640_v15 = vmax.f32 %v574_v57, 0.0  ;;  %v639_v16 = vmax.f32 %v570_v56, 0.0 }
 0x1e6   :  { %v663_v19 = vmax.f32 %v630_v18, 0.0  ;;  %v637_v18 = vmax.f32 %v566_v54, 0.0 }
 0x1e8   :  { %686 = vmatprep.subr.mxu0 %v663_v19  ;;  %v636_v19 = vmax.f32 %v564_v53, 0.0 }
 0x1e9   :  { %687 = vmatpush1.xpose.msra.mxu0 %v662_v21  ;;  %v634_v21 = vmax.f32 %v558_v49, 0.0 }
 0x1ea   :  { %688 = vmatprep.subr.mxu0 %v661_v23  ;;  %v679_v23 = vrot.slane %v1078_v40, %v1032_v48 }
 0x1ed   :  { %689 = vmatpush1.xpose.msra.mxu0 %v660_v24 }
 0x1ee   :  { %690 = vmatprep.subr.mxu0 %v659_v26 }
 0x1f1   :  { %691 = vmatpush1.xpose.msra.mxu0 %v658_v28 }
 0x1f2   :  { %692 = vmatprep.subr.mxu0 %v657_v30 }
 0x1f5   :  { %693 = vmatpush1.xpose.msra.mxu0 %v656_v32 }
 0x1f6   :  { %694 = vmatprep.subr.mxu0 %v655_v34 }
 0x1f9   :  { %695 = vmatpush1.xpose.msra.mxu0 %v654_v36 }
 0x1fa   :  { %696 = vmatprep.subr.mxu0 %v653_v38 }
 0x1fd   :  { %697 = vmatpush1.xpose.msra.mxu0 %v652_v52 }
 0x1fe   :  { %698 = vmatprep.subr.mxu0 %v651_v3 }
 0x201   :  { %699 = vmatpush1.xpose.msra.mxu0 %v650_v4 }
 0x202   :  { %700 = vmatprep.subr.mxu0 %v649_v5 }
 0x205   :  { %701 = vmatpush1.xpose.msra.mxu0 %v648_v6 }
 0x206   :  { %702 = vmatprep.subr.mxu0 %v647_v62 }
 0x209   :  { %703 = vmatpush1.xpose.msra.mxu0 %v646_v7 }
 0x20a   :  { %704 = vmatprep.subr.mxu0 %v645_v8 }
 0x20d   :  { %705 = vmatpush1.xpose.msra.mxu0 %v644_v9 }
 0x20e   :  { %706 = vmatprep.subr.mxu0 %v643_v10 }
 0x211   :  { %707 = vmatpush1.xpose.msra.mxu0 %v642_v11 }
 0x212   :  { %708 = vmatprep.subr.mxu0 %v641_v13 }
 0x215   :  { %709 = vmatpush1.xpose.msra.mxu0 %v640_v15 }
 0x216   :  { %710 = vmatprep.subr.mxu0 %v639_v16 }
 0x219   :  { %711 = vmatpush1.xpose.msra.mxu0 %v638_v17 }
 0x21a   :  { %712 = vmatprep.subr.mxu0 %v637_v18 }
 0x21d   :  { %713 = vmatpush1.xpose.msra.mxu0 %v636_v19 }
 0x21e   :  { %714 = vmatprep.subr.mxu0 %v635_v20 }
 0x221   :  { %715 = vmatpush1.xpose.msra.mxu0 %v634_v21 }
 0x222   :  { %716 = vmatprep.subr.mxu0 %v633_v22 }
 0x225   :  { %717 = vmatpush1.xpose.msra.mxu0 %v632_v44 }
 0x228   :  { %751 = vmatmul.mubr.f32.vlgmr.msra.gmra.mxu0 %v679_v23 }
 0x2e8   :  { %v752_v42 = vpop.f32.mrf.mxu0 }
 0x2e9   :  { %v753_v14 = vadd.f32 %v752_v42, %v674_v47 }
 0x2ea   :  { %v754_v24 = vpop.f32.mrf.mxu0 }
 0x2eb   :  { %756 = vst [vmem:[#allocation6] sm:$0x1] %v753_v14 }
 0x2ec   :  { %919 = shalt.err (!%p916_p9)
}
 0x2ed   :  { %766 = dma.vmem_to_hbm [thread:$0]  %s764_s30, 16, %s1184_s7, [#allocation5]  }
 0x2ee   :  { %930 = dma.done.wait [#allocation5], 16  }
 0x2ef   :  { %931 = vsyncadd [#allocation5], 4294967280 }
 0x2f0   :  { %770 = vsyncpa [#allocation4], 1 }
 0x2f1   :  { %771 = vsyncpa [#allocation5], 1 }

</bundles_post_ra>
